<compile_context>
chip_gen: v6e
topology: v6e:2x2x1
jax: 0.10.0
libtpu: 0.0.40
codegen_flags: <defaults>
</compile_context>

<pallas_src>
import jax
import jax.numpy as jnp
from jax.experimental import pallas as pl
from jax.experimental.pallas import tpu as pltpu


def _round_up(x, m):
    return ((x + m - 1) // m) * m


def _tensorcores_per_chip() -> int:
    """v7x has 2 TensorCores per chip (grid 'parallel' axes shard across them);
    v5e/v6e have 1."""
    try:
        kind = jax.devices()[0].device_kind.lower()
    except Exception:
        return 1
    return 2 if "v7" in kind else 1


# ----------------------------------------------------------------------------
# Kernel
# ----------------------------------------------------------------------------
def trpo_fused_kernel(
    x_ref,
    w1_ref, b1_ref, w2_ref, b2_ref,     # feature extractor
    wh1_ref, bh1_ref,                   # fused actor/critic hidden layer
    wh2_ref, bh2_ref,                   # fused (block-diag, lane-padded) final layer
    out_ref,                            # (tile_b, out_pad) output
):
    x = x_ref[...]

    # feature_extractor: Linear -> Tanh -> Linear -> Tanh
    # matmul operands may be bf16; accumulation and tanh always in f32.
    h = jnp.tanh(
        jnp.dot(x, w1_ref[...], preferred_element_type=jnp.float32) + b1_ref[...]
    )
    feat = jnp.tanh(
        jnp.dot(h.astype(w2_ref.dtype), w2_ref[...],
                preferred_element_type=jnp.float32) + b2_ref[...]
    )

    # fused actor||critic hidden layer: one matmul + one tanh
    hc = jnp.tanh(
        jnp.dot(feat.astype(wh1_ref.dtype), wh1_ref[...],
                preferred_element_type=jnp.float32) + bh1_ref[...]
    )

    # fused final layer: block-diagonal weight.
    # Columns [0:action_dim] = logits, column [action_dim] = value, rest zero.
    out_ref[...] = (
        jnp.dot(hc.astype(wh2_ref.dtype), wh2_ref[...],
                preferred_element_type=jnp.float32) + bh2_ref[...]
    )


# ----------------------------------------------------------------------------
# Parameter init / head fusion (done once per parameter set, outside the jit'ed
# hot path)
# ----------------------------------------------------------------------------
def xavier_uniform(key, fan_in, fan_out, dtype=jnp.float32):
    # torch.nn.init.xavier_uniform_: U(-a, a), a = sqrt(6 / (fan_in + fan_out))
    bound = (6.0 / (fan_in + fan_out)) ** 0.5
    return jax.random.uniform(
        key, (fan_in, fan_out), dtype=dtype, minval=-bound, maxval=bound
    )


def init_trpo_params(key, state_dim, action_dim, hidden_dim=128):
    half = hidden_dim // 2
    keys = jax.random.split(key, 6)
    return {
        # feature extractor
        "w1": xavier_uniform(keys[0], state_dim, hidden_dim),
        "b1": jnp.zeros((1, hidden_dim), jnp.float32),
        "w2": xavier_uniform(keys[1], hidden_dim, hidden_dim),
        "b2": jnp.zeros((1, hidden_dim), jnp.float32),
        # actor
        "wa1": xavier_uniform(keys[2], hidden_dim, half),
        "ba1": jnp.zeros((1, half), jnp.float32),
        "wa2": xavier_uniform(keys[3], half, action_dim),
        "ba2": jnp.zeros((1, action_dim), jnp.float32),
        # critic
        "wc1": xavier_uniform(keys[4], hidden_dim, half),
        "bc1": jnp.zeros((1, half), jnp.float32),
        "wc2": xavier_uniform(keys[5], half, 1),
        "bc2": jnp.zeros((1, 1), jnp.float32),
    }


def _fuse_heads(params):
    """Build fused actor||critic weights (block-diagonal final layer)."""
    action_dim = params["wa2"].shape[1]
    half_a = params["wa1"].shape[1]
    half_c = params["wc1"].shape[1]
    # Guard the block-diagonal layout (review correctness concern).
    assert half_a == half_c, "head fusion assumes symmetric actor/critic hidden widths"
    half = half_a
    head_out = action_dim + 1
    # Narrow output slab: just round head_out up to a multiple of 8 (16 for
    # action_dim=9). 8x less HBM writeback than a 128-lane slab.
    out_pad = max(8, _round_up(head_out, 8))

    # layer 1: concat along output features -> one matmul + one tanh
    wh1 = jnp.concatenate([params["wa1"], params["wc1"]], axis=1)   # (hidden, 2*half)
    bh1 = jnp.concatenate([params["ba1"], params["bc1"]], axis=1)   # (1, 2*half)
    # layer 2: block-diagonal, zero-padded to out_pad output columns.
    wh2 = jnp.zeros((2 * half, out_pad), jnp.float32)
    wh2 = wh2.at[:half, :action_dim].set(params["wa2"])
    wh2 = wh2.at[half:, action_dim:head_out].set(params["wc2"])
    bh2 = jnp.zeros((1, out_pad), jnp.float32)
    bh2 = bh2.at[:, :action_dim].set(params["ba2"])
    bh2 = bh2.at[:, action_dim:head_out].set(params["bc2"])
    return wh1, bh1, wh2, bh2, action_dim, out_pad


def _select_tiling(batch, n_tc):
    """Pick (tile_b, padded_batch). Sublane-aligned; big tiles for big batches;
    at least 2 grid steps on v7x so both TensorCores get work."""
    padded_8 = max(8, _round_up(batch, 8))
    if batch >= 512:
        tile_b = 512                      # amortize per-grid-step overhead
    elif padded_8 >= 256:
        tile_b = 128
    elif padded_8 >= 128:
        if n_tc >= 2:
            tile_b = _round_up((padded_8 + 1) // 2, 8)   # 2 tiles -> 2 TCs
        else:
            tile_b = 128
    else:
        tile_b = padded_8                 # single tile, latency regime
    padded_batch = _round_up(padded_8, tile_b)
    return tile_b, padded_batch


# ----------------------------------------------------------------------------
# Forward factory: fuse/cast weights once, return a jitted forward(state)
# ----------------------------------------------------------------------------
def make_trpo_forward(params, compute_dtype=jnp.float32):
    wh1, bh1, wh2, bh2, action_dim, out_pad = _fuse_heads(params)

    # Matmul operands in compute_dtype. bf16 operands are fine on v5e, v6e and
    # v7x (the MXU takes bf16 on all three); biases stay f32 (added to the f32
    # accumulator) and tanh runs in f32 (v5e EUP has no bf16 path).
    w1 = params["w1"].astype(compute_dtype)
    w2 = params["w2"].astype(compute_dtype)
    wh1 = wh1.astype(compute_dtype)
    wh2 = wh2.astype(compute_dtype)
    b1 = params["b1"].astype(jnp.float32)
    b2 = params["b2"].astype(jnp.float32)
    bh1 = bh1.astype(jnp.float32)
    bh2 = bh2.astype(jnp.float32)

    weights = (w1, b1, w2, b2, wh1, bh1, wh2, bh2)
    state_dim, hidden = w1.shape
    n_tc = _tensorcores_per_chip()

    @jax.jit
    def forward(state):
        batch = state.shape[0]
        tile_b, padded_batch = _select_tiling(batch, n_tc)

        x = state.astype(compute_dtype)
        if padded_batch != batch:
            x = jnp.pad(x, ((0, padded_batch - batch), (0, 0)))

        # Advisory cost hint so XLA can overlap the slice/cast epilogue with
        # the custom call (cheap win for the latency-bound small-batch path).
        flops = 2 * padded_batch * hidden * (state_dim + hidden + hidden + out_pad)
        transcendentals = 3 * padded_batch * hidden
        bytes_accessed = (
            padded_batch * state_dim * x.dtype.itemsize
            + padded_batch * out_pad * 4
            + sum(int(w.size) * w.dtype.itemsize for w in weights)
        )

        def resident(arr):
            # Full-array block, constant block index -> stays VMEM-resident
            # across all batch tiles (never re-DMA'd per tile).
            # TODO(synk): pipeline_mode=pl.Buffered(1) would drop the unused
            # second pipeline buffer for these (negligible at hidden=32).
            return pl.BlockSpec(arr.shape, lambda i: (0, 0))

        out = pl.pallas_call(
            trpo_fused_kernel,
            out_shape=jax.ShapeDtypeStruct((padded_batch, out_pad), jnp.float32),
            grid=(padded_batch // tile_b,),
            in_specs=[pl.BlockSpec((tile_b, state_dim), lambda i: (i, 0))]
                     + [resident(w) for w in weights],
            out_specs=pl.BlockSpec((tile_b, out_pad), lambda i: (i, 0)),
            compiler_params=pltpu.CompilerParams(
                dimension_semantics=("parallel",),
            ),
            cost_estimate=pl.CostEstimate(
                flops=flops,
                transcendentals=transcendentals,
                bytes_accessed=bytes_accessed,
            ),
        )(x, *weights)

        logits = out[:batch, :action_dim]
        value = out[:batch, action_dim:action_dim + 1]
        return logits, value

    return forward


def trpo_forward(state, params, compute_dtype=jnp.float32):
    """Convenience one-shot wrapper (for cached/repeated use, call
    make_trpo_forward once and reuse the returned jitted function)."""
    return make_trpo_forward(params, compute_dtype)(state)


def trpo_forward_ref(state, params):
    # Pure-JAX reference (matches the PyTorch module's forward).
    h = jnp.tanh(state @ params["w1"] + params["b1"])
    feat = jnp.tanh(h @ params["w2"] + params["b2"])
    a = jnp.tanh(feat @ params["wa1"] + params["ba1"])
    logits = a @ params["wa2"] + params["ba2"]
    c = jnp.tanh(feat @ params["wc1"] + params["bc1"])
    value = c @ params["wc2"] + params["bc2"]
    return logits, value


if __name__ == "__main__":
    key = jax.random.PRNGKey(0)
    k_param, k_state, k_state_big = jax.random.split(key, 3)

    # Racetrack-style small problem: state_dim=8, action_dim=9 (3x3 accel grid),
    # hidden=32, batch=4 (padded to 8 sublanes inside the wrapper).
    batch, state_dim, action_dim, hidden_dim = 4, 8, 9, 32

    params = init_trpo_params(k_param, state_dim, action_dim, hidden_dim)

    # --- small-batch (latency) path, f32: tight correctness check ------------
    state = jax.random.normal(k_state, (batch, state_dim), dtype=jnp.float32)
    ref_logits, ref_value = trpo_forward_ref(state, params)

    fwd_f32 = make_trpo_forward(params, compute_dtype=jnp.float32)
    logits, value = fwd_f32(state)
    logits = jax.block_until_ready(logits)
    value = jax.block_until_ready(value)
    assert logits.shape == (batch, action_dim)
    assert value.shape == (batch, 1)
    assert jnp.allclose(logits, ref_logits, atol=1e-5, rtol=1e-5)
    assert jnp.allclose(value, ref_value, atol=1e-5, rtol=1e-5)

    # --- multi-tile (throughput) path, f32 -----------------------------------
    big_batch = 160
    state_big = jax.random.normal(k_state_big, (big_batch, state_dim), dtype=jnp.float32)
    ref_lb, ref_vb = trpo_forward_ref(state_big, params)
    logits_b, value_b = fwd_f32(state_big)
    logits_b = jax.block_until_ready(logits_b)
    value_b = jax.block_until_ready(value_b)
    assert logits_b.shape == (big_batch, action_dim)
    assert value_b.shape == (big_batch, 1)
    assert jnp.allclose(logits_b, ref_lb, atol=1e-5, rtol=1e-5)
    assert jnp.allclose(value_b, ref_vb, atol=1e-5, rtol=1e-5)

    # --- bf16 matmul-operand path (valid on v5e/v6e/v7x), relaxed check ------
    fwd_bf16 = make_trpo_forward(params, compute_dtype=jnp.bfloat16)
    logits_bf, value_bf = fwd_bf16(state)
    logits_bf = jax.block_until_ready(logits_bf)
    value_bf = jax.block_until_ready(value_bf)
    assert jnp.allclose(logits_bf, ref_logits, atol=1e-1, rtol=1e-1)
    assert jnp.allclose(value_bf, ref_value, atol=1e-1, rtol=1e-1)

    print("KERNEL_OK")
</pallas_src>

<mosaic_0001>
module attributes {stable_mosaic.version = 11 : i64} {
  func.func @trpo_fused_kernel(%arg0: i32, %arg1: memref<8x8xf32, #tpu.memory_space<vmem>>, %arg2: memref<8x32xf32, #tpu.memory_space<vmem>>, %arg3: memref<1x32xf32, #tpu.memory_space<vmem>>, %arg4: memref<32x32xf32, #tpu.memory_space<vmem>>, %arg5: memref<1x32xf32, #tpu.memory_space<vmem>>, %arg6: memref<32x32xf32, #tpu.memory_space<vmem>>, %arg7: memref<1x32xf32, #tpu.memory_space<vmem>>, %arg8: memref<32x16xf32, #tpu.memory_space<vmem>>, %arg9: memref<1x16xf32, #tpu.memory_space<vmem>>, %arg10: memref<8x16xf32, #tpu.memory_space<vmem>>) attributes {dimension_semantics = [#tpu.dimension_semantics<parallel>], iteration_bounds = array<i64: 1>, scalar_prefetch = 0 : i64, scratch_operands = 0 : i64, tpu.core_type = #tpu.core_type<tc>, window_params = [{transform_indices = @transform_0, window_bounds = array<i64: 8, 8>}, {pipeline_mode = #tpu.pipeline_mode<synchronous>, transform_indices = @transform_1, window_bounds = array<i64: 8, 32>}, {pipeline_mode = #tpu.pipeline_mode<synchronous>, transform_indices = @transform_2, window_bounds = array<i64: 1, 32>}, {pipeline_mode = #tpu.pipeline_mode<synchronous>, transform_indices = @transform_3, window_bounds = array<i64: 32, 32>}, {pipeline_mode = #tpu.pipeline_mode<synchronous>, transform_indices = @transform_4, window_bounds = array<i64: 1, 32>}, {pipeline_mode = #tpu.pipeline_mode<synchronous>, transform_indices = @transform_5, window_bounds = array<i64: 32, 32>}, {pipeline_mode = #tpu.pipeline_mode<synchronous>, transform_indices = @transform_6, window_bounds = array<i64: 1, 32>}, {pipeline_mode = #tpu.pipeline_mode<synchronous>, transform_indices = @transform_7, window_bounds = array<i64: 32, 16>}, {pipeline_mode = #tpu.pipeline_mode<synchronous>, transform_indices = @transform_8, window_bounds = array<i64: 1, 16>}, {transform_indices = @transform_9, window_bounds = array<i64: 8, 16>}]} {
    %c0 = arith.constant 0 : index
    %c0_0 = arith.constant 0 : index
    %0 = vector.load %arg1[%c0, %c0_0] : memref<8x8xf32, #tpu.memory_space<vmem>>, vector<8x8xf32>
    %c0_1 = arith.constant 0 : index
    %c0_2 = arith.constant 0 : index
    %1 = vector.load %arg2[%c0_1, %c0_2] : memref<8x32xf32, #tpu.memory_space<vmem>>, vector<8x32xf32>
    %cst = arith.constant dense<0.000000e+00> : vector<8x32xf32>
    %2 = tpu.matmul %0, %1, %cst {dimension_numbers = #tpu.dot_dimension_numbers<[1], [0], [0], [1], [0, 0, 1, 1], [], []>} : vector<8x8xf32>, vector<8x32xf32>, vector<8x32xf32> -> vector<8x32xf32>
    %c0_3 = arith.constant 0 : index
    %c0_4 = arith.constant 0 : index
    %3 = vector.load %arg3[%c0_3, %c0_4] : memref<1x32xf32, #tpu.memory_space<vmem>>, vector<1x32xf32>
    %4 = vector.broadcast %3 : vector<1x32xf32> to vector<8x32xf32>
    %5 = arith.addf %2, %4 : vector<8x32xf32>
    %6 = math.tanh %5 : vector<8x32xf32>
    %c0_5 = arith.constant 0 : index
    %c0_6 = arith.constant 0 : index
    %7 = vector.load %arg4[%c0_5, %c0_6] : memref<32x32xf32, #tpu.memory_space<vmem>>, vector<32x32xf32>
    %cst_7 = arith.constant dense<0.000000e+00> : vector<8x32xf32>
    %8 = tpu.matmul %6, %7, %cst_7 {dimension_numbers = #tpu.dot_dimension_numbers<[1], [0], [0], [1], [0, 0, 1, 1], [], []>} : vector<8x32xf32>, vector<32x32xf32>, vector<8x32xf32> -> vector<8x32xf32>
    %c0_8 = arith.constant 0 : index
    %c0_9 = arith.constant 0 : index
    %9 = vector.load %arg5[%c0_8, %c0_9] : memref<1x32xf32, #tpu.memory_space<vmem>>, vector<1x32xf32>
    %10 = vector.broadcast %9 : vector<1x32xf32> to vector<8x32xf32>
    %11 = arith.addf %8, %10 : vector<8x32xf32>
    %12 = math.tanh %11 : vector<8x32xf32>
    %c0_10 = arith.constant 0 : index
    %c0_11 = arith.constant 0 : index
    %13 = vector.load %arg6[%c0_10, %c0_11] : memref<32x32xf32, #tpu.memory_space<vmem>>, vector<32x32xf32>
    %cst_12 = arith.constant dense<0.000000e+00> : vector<8x32xf32>
    %14 = tpu.matmul %12, %13, %cst_12 {dimension_numbers = #tpu.dot_dimension_numbers<[1], [0], [0], [1], [0, 0, 1, 1], [], []>} : vector<8x32xf32>, vector<32x32xf32>, vector<8x32xf32> -> vector<8x32xf32>
    %c0_13 = arith.constant 0 : index
    %c0_14 = arith.constant 0 : index
    %15 = vector.load %arg7[%c0_13, %c0_14] : memref<1x32xf32, #tpu.memory_space<vmem>>, vector<1x32xf32>
    %16 = vector.broadcast %15 : vector<1x32xf32> to vector<8x32xf32>
    %17 = arith.addf %14, %16 : vector<8x32xf32>
    %18 = math.tanh %17 : vector<8x32xf32>
    %c0_15 = arith.constant 0 : index
    %c0_16 = arith.constant 0 : index
    %19 = vector.load %arg8[%c0_15, %c0_16] : memref<32x16xf32, #tpu.memory_space<vmem>>, vector<32x16xf32>
    %cst_17 = arith.constant dense<0.000000e+00> : vector<8x16xf32>
    %20 = tpu.matmul %18, %19, %cst_17 {dimension_numbers = #tpu.dot_dimension_numbers<[1], [0], [0], [1], [0, 0, 1, 1], [], []>} : vector<8x32xf32>, vector<32x16xf32>, vector<8x16xf32> -> vector<8x16xf32>
    %c0_18 = arith.constant 0 : index
    %c0_19 = arith.constant 0 : index
    %21 = vector.load %arg9[%c0_18, %c0_19] : memref<1x16xf32, #tpu.memory_space<vmem>>, vector<1x16xf32>
    %22 = vector.broadcast %21 : vector<1x16xf32> to vector<8x16xf32>
    %23 = arith.addf %20, %22 : vector<8x16xf32>
    %c0_20 = arith.constant 0 : index
    %c0_21 = arith.constant 0 : index
    %24 = vector.load %arg10[%c0_20, %c0_21] : memref<8x16xf32, #tpu.memory_space<vmem>>, vector<8x16xf32>
    tpu.vector_store %arg10[%c0_20, %c0_21], %23 {strides = array<i32>} : memref<8x16xf32, #tpu.memory_space<vmem>>, vector<8x16xf32>,
    return
  }
  func.func @transform_0(%arg0: i32) -> (i32, i32) {
    %c0_i32 = arith.constant 0 : i32
    %c0_i32_0 = arith.constant 0 : i32
    return %arg0, %c0_i32 : i32, i32
  }
  func.func @transform_1(%arg0: i32) -> (i32, i32) {
    %c0_i32 = arith.constant 0 : i32
    %c0_i32_0 = arith.constant 0 : i32
    %c0_i32_1 = arith.constant 0 : i32
    return %c0_i32, %c0_i32_0 : i32, i32
  }
  func.func @transform_2(%arg0: i32) -> (i32, i32) {
    %c0_i32 = arith.constant 0 : i32
    %c0_i32_0 = arith.constant 0 : i32
    %c0_i32_1 = arith.constant 0 : i32
    return %c0_i32, %c0_i32_0 : i32, i32
  }
  func.func @transform_3(%arg0: i32) -> (i32, i32) {
    %c0_i32 = arith.constant 0 : i32
    %c0_i32_0 = arith.constant 0 : i32
    %c0_i32_1 = arith.constant 0 : i32
    return %c0_i32, %c0_i32_0 : i32, i32
  }
  func.func @transform_4(%arg0: i32) -> (i32, i32) {
    %c0_i32 = arith.constant 0 : i32
    %c0_i32_0 = arith.constant 0 : i32
    %c0_i32_1 = arith.constant 0 : i32
    return %c0_i32, %c0_i32_0 : i32, i32
  }
  func.func @transform_5(%arg0: i32) -> (i32, i32) {
    %c0_i32 = arith.constant 0 : i32
    %c0_i32_0 = arith.constant 0 : i32
    %c0_i32_1 = arith.constant 0 : i32
    return %c0_i32, %c0_i32_0 : i32, i32
  }
  func.func @transform_6(%arg0: i32) -> (i32, i32) {
    %c0_i32 = arith.constant 0 : i32
    %c0_i32_0 = arith.constant 0 : i32
    %c0_i32_1 = arith.constant 0 : i32
    return %c0_i32, %c0_i32_0 : i32, i32
  }
  func.func @transform_7(%arg0: i32) -> (i32, i32) {
    %c0_i32 = arith.constant 0 : i32
    %c0_i32_0 = arith.constant 0 : i32
    %c0_i32_1 = arith.constant 0 : i32
    return %c0_i32, %c0_i32_0 : i32, i32
  }
  func.func @transform_8(%arg0: i32) -> (i32, i32) {
    %c0_i32 = arith.constant 0 : i32
    %c0_i32_0 = arith.constant 0 : i32
    %c0_i32_1 = arith.constant 0 : i32
    return %c0_i32, %c0_i32_0 : i32, i32
  }
  func.func @transform_9(%arg0: i32) -> (i32, i32) {
    %c0_i32 = arith.constant 0 : i32
    %c0_i32_0 = arith.constant 0 : i32
    return %arg0, %c0_i32 : i32, i32
  }
}

</mosaic_0001>

<bundles_post_ra>
// kernel: forward.1
= control target key start
LH: loop header
LB: loop body
LE: loop exit
PB: predicated region body
PF: predicated region fallthrough
CT: control target
= control target key end

     0   :  { %14 = vsyncpa [#allocation3], 0  ;;  %s654_s0 = inlined_call_operand.vmem [shape: f32[8,8], index: 0, kind: input, shape index: {}]   ;;  %s655_s1 = inlined_call_operand.vmem [shape: f32[8,32], index: 1, kind: input, shape index: {}]   ;;  %s656_s2 = inlined_call_operand.vmem [shape: f32[1,32], index: 2, kind: input, shape index: {}, may-alias: {2,4,6}]   ;;  %s657_s3 = inlined_call_operand.hbm [shape: f32[32,32], index: 3, kind: input, shape index: {}]   ;;  %s658_s4 = inlined_call_operand.vmem [shape: f32[1,32], index: 4, kind: input, shape index: {}, may-alias: {2,4,6}]   ;;  %s659_s5 = inlined_call_operand.hbm [shape: f32[32,32], index: 5, kind: input, shape index: {}]   ;;  %s660_s6 = inlined_call_operand.vmem [shape: f32[1,32], index: 6, kind: input, shape index: {}, may-alias: {2,4,6}]   ;;  %s661_s7 = inlined_call_operand.hbm [shape: f32[32,16], index: 7, kind: input, shape index: {}]   ;;  %s662_s8 = inlined_call_operand.vmem [shape: f32[1,16], index: 8, kind: input, shape index: {}]   ;;  %s663_s9 = inlined_call_operand.vmem [shape: f32[8,16], index: 9, kind: output, shape index: {}]  }
   0x1   :  { %15 = vsyncpa [#allocation5], 0  ;;  %s560_s30 = smov [#allocation4]   ;;  %s561_s11 = smov [#allocation2]  }
   0x2   :  { %s41_s10 = sshll.u32 %s560_s30, 4  ;;  %s27_s12 = sshll.u32 %s561_s11, 4  ;;  %s42_s10 = int_to_ptr.vmem [resolvable:$true] %s41_s10  ;;  %s28_s12 = int_to_ptr.vmem [resolvable:$true] %s27_s12 }
   0x3   :  { %s504_s13 = scalar_lea.vmem %s42_s10, 512  ;;  %p509_p1 = scmp.lt.s32.totalorder %s42_s10, %s42_s10 }
   0x4   :  { %p505_p0 = scmp.ne.s32.totalorder %s42_s10, %s504_s13  ;;  %p510_p2 = scmp.lt.s32.totalorder %s504_s13, %s504_s13 }
   0x6   :  { %p511_p3 = por %p510_p2, %p509_p1 }
   0x8   :  { %p512_p4 = pnand %p511_p3, %p505_p0 }
   0xa   :  { %515 = shalt.err (!%p512_p4)
}
   0xb   :  { %s562_s14 = smov 128   ;;  %s563_s15 = smov 8  }
   0xc   :  { %47 = dma.hbm_to_vmem [thread:$0]  %s659_s5, 512, %s42_s10, [#allocation5], %s562_s14, %s562_s14, %s563_s15  }
   0xd   :  { %s524_s18 = scalar_lea.vmem %s28_s12, 512  ;;  %p529_p6 = scmp.lt.s32.totalorder %s28_s12, %s28_s12 }
   0xe   :  { %p525_p5 = scmp.ne.s32.totalorder %s28_s12, %s524_s18  ;;  %p530_p7 = scmp.lt.s32.totalorder %s524_s18, %s524_s18 }
  0x10   :  { %p531_p8 = por %p530_p7, %p529_p6 }
  0x12   :  { %p532_p9 = pnand %p531_p8, %p525_p5 }
  0x14   :  { %535 = shalt.err (!%p532_p9)
}
  0x15   :  { %33 = dma.hbm_to_vmem [thread:$0]  %s657_s3, 512, %s28_s12, [#allocation3], %s562_s14, %s562_s14, %s563_s15  }
  0x16   :  { %s564_s21 = smov [#allocation6]  }
  0x17   :  { %s55_s22 = sshll.u32 %s564_s21, 4  ;;  %s56_s22 = int_to_ptr.vmem [resolvable:$true] %s55_s22 }
  0x18   :  { %s544_s23 = scalar_lea.vmem %s56_s22, 512  ;;  %p549_p11 = scmp.lt.s32.totalorder %s56_s22, %s56_s22 }
  0x19   :  { %p545_p10 = scmp.ne.s32.totalorder %s56_s22, %s544_s23  ;;  %p550_p12 = scmp.lt.s32.totalorder %s544_s23, %s544_s23 }
  0x1b   :  { %p551_p13 = por %p550_p12, %p549_p11 }
  0x1d   :  { %p552_p0 = pnand %p551_p13, %p545_p10 }
  0x1f   :  { %555 = shalt.err (!%p552_p0)
}
  0x20   :  { %61 = dma.hbm_to_vmem [thread:$0]  %s661_s7, 512, %s56_s22, [#allocation5], %s562_s14, %s562_s14, %s563_s15  }
  0x21   :  { %556 = dma.done.wait [#allocation3], 512  }
  0x22   :  { %557 = vsyncadd [#allocation3], 4294966784 }
  0x23   :  { %558 = dma.done.wait [#allocation5], 1024  }
  0x24   :  { %559 = vsyncadd [#allocation5], 4294966272  ;;  %v565_v0 = vmov 0.0   ;;  %vm566_vm0 = vmmov 0   ;;  %vm82_vm1 = vcmask 64512   ;;  %v74_v1 = vld [vmem:[%s655_s1] sm:$0xff] }
  0x25   :  { %445 = vmatprep.subr.mxu0 %v565_v0  ;;  %447 = vmatprep.mubr.msk.f32.mxu0 %vm566_vm0, %v565_v0  ;;  %v73_v2 = vld [vmem:[%s654_s0] sm:$0xff]  ;;  %v160_v3 = vld [vmem:[#allocation2 + $0x18] sm:$0xff]  ;;  %v159_v4 = vld [vmem:[#allocation2 + $0x10] sm:$0xff]  ;;  %vm168_vm2 = vcmask 261120   ;;  %vm412_vm3 = vcmask 130048  }
  0x26   :  { %450 = vmatprep.subr.mxu1 %v565_v0  ;;  %458 = vmatprep.mubr.msk.f32.mxu1 %vm566_vm0, %v565_v0  ;;  %v158_v5 = vld [vmem:[#allocation2 + $0x8] sm:$0xff]  ;;  %v157_v6 = vld [vmem:[#allocation2] sm:$0xff]  ;;  %v246_v12 = vld [vmem:[#allocation4 + $0x18] sm:$0xff] }
  0x27   :  { %446 = vmatpush3.msra.mxu0 %v74_v1  ;;  %451 = vmatpush3.msra.mxu1 %v160_v3  ;;  %v420_v7 = vld [vmem:[%s656_s2] ss:$0 sm:$0xff]  ;;  %v245_v13 = vld [vmem:[#allocation4 + $0x10] sm:$0xff]  ;;  %v244_v14 = vld [vmem:[#allocation4 + $0x8] sm:$0xff] }
  0x28   :  { %448 = vmatmul.mubr.msk.f32.vlgmr.msra.gmra.mxu0 %vm82_vm1, %v73_v2  ;;  %461 = vmatprep.subr.mxu0 %v565_v0  ;;  %v243_v15 = vld [vmem:[#allocation4] sm:$0xff]  ;;  %v331_v21 = vld [vmem:[#allocation6 + $0x18] sm:$0xff]  ;;  %v330_v22 = vld [vmem:[#allocation6 + $0x10] sm:$0xff] }
  0x29   :  { %469 = vmatprep.mubr.msk.f32.mxu0 %vm566_vm0, %v565_v0  ;;  %452 = vmatprep.subr.mxu1 %v565_v0  ;;  %v422_v16 = vld [vmem:[%s658_s4] ss:$0 sm:$0xff]  ;;  %v329_v23 = vld [vmem:[#allocation6 + $0x8] sm:$0xff] }
  0x2a   :  { %453 = vmatpush3.msra.mxu1 %v159_v4  ;;  %462 = vmatpush3.msra.mxu0 %v246_v12  ;;  %v328_v24 = vld [vmem:[#allocation6] sm:$0xff] }
  0x2b   :  { %454 = vmatprep.subr.mxu1 %v565_v0  ;;  %463 = vmatprep.subr.mxu0 %v565_v0  ;;  %v424_v25 = vld [vmem:[%s660_s6] ss:$0 sm:$0xff] }
  0x2c   :  { %455 = vmatpush3.msra.mxu1 %v158_v5  ;;  %464 = vmatpush3.msra.mxu0 %v245_v13  ;;  %v426_v30 = vld [vmem:[%s662_s8] ss:$0 sm:$0xff] }
  0x2d   :  { %456 = vmatprep.subr.mxu1 %v565_v0  ;;  %465 = vmatprep.subr.mxu0 %v565_v0 }
  0x2e   :  { %457 = vmatpush3.msra.mxu1 %v157_v6  ;;  %466 = vmatpush3.msra.mxu0 %v244_v14 }
  0x2f   :  { %472 = vmatprep.subr.mxu1 %v565_v0  ;;  %467 = vmatprep.subr.mxu0 %v565_v0 }
  0x30   :  { %468 = vmatpush3.msra.mxu0 %v243_v15 }
  0xe8   :  { %v152_v8 = vpop.f32.mrf.mxu0 }
  0xe9   :  { %v153_v9 = vadd.f32 %v420_v7, %v152_v8 }
  0xea   :  { %v449_v10 = vpop.f32.mrf.mxu0 }
  0xeb   :  { %490 = vtanh.f32 %v153_v9 }
  0xf8   :  { %v491_v11 = vpop.eup %490 }
  0xf9   :  { %459 = vmatmul.mubr.msk.f32.vlgmr.msra.gmra.mxu1 %vm168_vm2, %v491_v11 }
  0xfa   :  { %480 = vmatprep.mubr.msk.f32.mxu1 %vm566_vm0, %v565_v0  ;;  %473 = vmatpush3.msra.mxu1 %v331_v21 }
  0xfb   :  { %474 = vmatprep.subr.mxu1 %v565_v0 }
  0xfc   :  { %475 = vmatpush3.msra.mxu1 %v330_v22 }
  0xfd   :  { %476 = vmatprep.subr.mxu1 %v565_v0 }
  0xfe   :  { %477 = vmatpush3.msra.mxu1 %v329_v23 }
  0xff   :  { %478 = vmatprep.subr.mxu1 %v565_v0 }
 0x100   :  { %479 = vmatpush3.msra.mxu1 %v328_v24 }
 0x1b9   :  { %v238_v17 = vpop.f32.mrf.mxu1 }
 0x1ba   :  { %v239_v18 = vadd.f32 %v422_v16, %v238_v17 }
 0x1bb   :  { %v460_v19 = vpop.f32.mrf.mxu1 }
 0x1bc   :  { %492 = vtanh.f32 %v239_v18 }
 0x1c9   :  { %v493_v20 = vpop.eup %492 }
 0x1ca   :  { %470 = vmatmul.mubr.msk.f32.vlgmr.msra.gmra.mxu0 %vm168_vm2, %v493_v20 }
 0x28a   :  { %v323_v26 = vpop.f32.mrf.mxu0 }
 0x28b   :  { %v324_v27 = vadd.f32 %v424_v25, %v323_v26 }
 0x28c   :  { %v471_v28 = vpop.f32.mrf.mxu0 }
 0x28d   :  { %494 = vtanh.f32 %v324_v27 }
 0x29a   :  { %v495_v29 = vpop.eup %494 }
 0x29b   :  { %481 = vmatmul.mubr.msk.f32.vlgmr.msra.gmra.mxu1 %vm168_vm2, %v495_v29 }
 0x35b   :  { %v408_v31 = vpop.f32.mrf.mxu1 }
 0x35c   :  { %v409_v32 = vadd.f32 %v426_v30, %v408_v31 }
 0x35d   :  { %v482_v33 = vpop.f32.mrf.mxu1 }
 0x35e   :  { %413 = vst.msk [vmem:[%s663_s9] sm:$0xff] %vm412_vm3, %v409_v32 }
 0x35f   :  { %418 = vsyncpa [#allocation3], 1 }
 0x360   :  { %419 = vsyncpa [#allocation5], 1 }

</bundles_post_ra>
